<compile_context>
chip_gen: v7x
topology: tpu7x:2x2x1
jax: 0.10.0
libtpu: 0.0.40
codegen_flags: <defaults>
</compile_context>

<pallas_src>
import functools
import math

import jax
import jax.numpy as jnp
from jax.experimental import pallas as pl
from jax.experimental.pallas import tpu as pltpu

# Module hyper-parameters (from the PyTorch file)
CONTEXT_LENGTH = 6
D_IN = 3
D_OUT = 2
NUM_HEADS = 2
DROPOUT = 0.0  # nn.Dropout(p=0.0) / eval mode -> identity


def _fused_mha_kernel(x_ref, xt_ref, wq_ref, wkt_ref, wvt_ref, bias_ref, o_ref,
                      *, num_heads, d_out, scale):
    """All heads, all batch rows, one invocation.

    x_ref   : (B*T, d_in)      tokens, batch folded into the sublane axis
    xt_ref  : (d_in, B*T)      same tokens, pre-transposed by the wrapper
    wq_ref  : (d_in, H*d_out)  stacked query weights (x @ Wq layout)
    wkt_ref : (H*d_out, d_in)  stacked key weights, transposed
    wvt_ref : (H*d_out, d_in)  stacked value weights, transposed
    bias_ref: (B*T, B*T)       0 where attention is allowed, -1e30 elsewhere
                               (block-diagonal per batch AND causal)
    o_ref   : (B*T, H*d_out)   concatenated per-head context (torch.cat layout)
    """
    f32 = jnp.float32
    bt, d_in = x_ref.shape
    hd = num_heads * d_out

    x = x_ref[...].astype(f32)
    xt = xt_ref[...].astype(f32)
    wq = wq_ref[...].astype(f32)
    wkt = wkt_ref[...].astype(f32)
    wvt = wvt_ref[...].astype(f32)
    bias = bias_ref[...].astype(f32)

    # Q / K^T / V^T projections as explicit VPU rank-1 FMAs (the d_in-wide
    # contraction is far too small for the MXU; keeps the vector-extended
    # slot free and avoids any in-kernel transpose).
    q = x[:, 0:1] * wq[0:1, :]            # (BT, HD)
    kt = wkt[:, 0:1] * xt[0:1, :]         # (HD, BT)
    vt = wvt[:, 0:1] * xt[0:1, :]         # (HD, BT)
    for d in range(1, d_in):
        q = q + x[:, d:d + 1] * wq[d:d + 1, :]
        kt = kt + wkt[:, d:d + 1] * xt[d:d + 1, :]
        vt = vt + wvt[:, d:d + 1] * xt[d:d + 1, :]
    q = q * scale                         # fold 1/sqrt(d_out) into q once

    col_idx = jax.lax.broadcasted_iota(jnp.int32, (1, hd), 1)
    out = jnp.zeros((bt, hd), f32)

    for h in range(num_heads):
        qh = q[:, h * d_out:(h + 1) * d_out]      # (BT, d_out)
        kth = kt[h * d_out:(h + 1) * d_out, :]    # (d_out, BT)

        # scores = q_h @ k_h^T via rank-1 VPU updates (d_out-wide contraction).
        s = qh[:, 0:1] * kth[0:1, :]
        for e in range(1, d_out):
            s = s + qh[:, e:e + 1] * kth[e:e + 1, :]
        s = s + bias                              # causal + same-batch mask

        # Numerically stable softmax; reciprocal on the EUP + 1 Newton step.
        m = jnp.max(s, axis=-1, keepdims=True)
        p = jnp.exp(s - m)
        denom = jnp.sum(p, axis=-1, keepdims=True)
        inv = pl.reciprocal(denom, approx=True)
        inv = inv * (2.0 - denom * inv)           # refine to full f32 accuracy
        attn = p * inv                            # (BT, BT)
        # TODO(synk): nn.Dropout(p=0.0) / eval mode is an identity -> omitted.

        # context = attn @ v_h: one XLU lane-reduction per output column;
        # scatter each column into the concatenated output slab with a
        # one-hot select (avoids unaligned lane concatenation and keeps a
        # single dense store at the end).
        for e in range(d_out):
            c = h * d_out + e
            ctx_col = jnp.sum(attn * vt[c:c + 1, :], axis=-1, keepdims=True)
            out = out + jnp.where(col_idx == c, ctx_col, 0.0)

    o_ref[...] = out.astype(o_ref.dtype)


def multi_head_attention(x, wq, wk, wv):
    """x: (B, T, d_in); wq/wk/wv: (num_heads, d_in, d_out).

    Per-head weights are nn.Linear weights already transposed (kernel computes
    x @ W). Returns (B, T, num_heads * d_out), matching
    torch.cat([head_i(x) for head_i in heads], dim=-1).
    """
    B, T, d_in = x.shape
    num_heads, _, d_out = wq.shape
    hd = num_heads * d_out
    scale = 1.0 / math.sqrt(d_out)

    # Free XLA-side layout prep (no in-kernel transposes / reshapes needed):
    x2 = x.reshape(B * T, d_in)                              # fold batch
    xt = x2.T                                                # (d_in, B*T)
    wq_s = jnp.transpose(wq, (1, 0, 2)).reshape(d_in, hd)    # (d_in, HD)
    wkt = jnp.transpose(wk, (1, 0, 2)).reshape(d_in, hd).T   # (HD, d_in)
    wvt = jnp.transpose(wv, (1, 0, 2)).reshape(d_in, hd).T   # (HD, d_in)

    # Block-diagonal (same batch) + causal additive mask over the folded axis.
    idx = jnp.arange(B * T)
    same_batch = (idx[:, None] // T) == (idx[None, :] // T)
    causal = (idx[None, :] % T) <= (idx[:, None] % T)
    bias = jnp.where(same_batch & causal, 0.0, -1e30).astype(jnp.float32)

    vmem = pltpu.MemorySpace.VMEM
    out = pl.pallas_call(
        functools.partial(_fused_mha_kernel, num_heads=num_heads,
                          d_out=d_out, scale=scale),
        out_shape=jax.ShapeDtypeStruct((B * T, hd), x.dtype),
        in_specs=[pl.BlockSpec(memory_space=vmem)] * 6,
        out_specs=pl.BlockSpec(memory_space=vmem),
    )(x2, xt, wq_s, wkt, wvt, bias)

    # (B*T, H*d_out) -> (B, T, H*d_out): contiguous reshape, not a transpose.
    return out.reshape(B, T, hd)


def _reference(x, wq, wk, wv):
    """Pure-JAX reference mirroring the PyTorch forward pass."""
    B, T, _ = x.shape
    outs = []
    mask = jnp.triu(jnp.ones((T, T), dtype=bool), k=1)
    for h in range(wq.shape[0]):
        q = x @ wq[h]
        k = x @ wk[h]
        v = x @ wv[h]
        scores = q @ jnp.swapaxes(k, 1, 2)
        scores = jnp.where(mask[None], -jnp.inf, scores)
        w = jax.nn.softmax(scores / math.sqrt(k.shape[-1]), axis=-1)
        outs.append(w @ v)
    return jnp.concatenate(outs, axis=-1)


if __name__ == "__main__":
    key = jax.random.PRNGKey(0)
    kx, kq, kk, kv = jax.random.split(key, 4)

    B, T = 2, CONTEXT_LENGTH
    x = jax.random.normal(kx, (B, T, D_IN), dtype=jnp.float32)

    # nn.Linear-style uniform(-1/sqrt(d_in), 1/sqrt(d_in)) init, deterministic.
    bound = 1.0 / math.sqrt(D_IN)
    wq = jax.random.uniform(kq, (NUM_HEADS, D_IN, D_OUT), jnp.float32, -bound, bound)
    wk = jax.random.uniform(kk, (NUM_HEADS, D_IN, D_OUT), jnp.float32, -bound, bound)
    wv = jax.random.uniform(kv, (NUM_HEADS, D_IN, D_OUT), jnp.float32, -bound, bound)

    fn = jax.jit(multi_head_attention)  # fuse the XLA-side layout prep
    out = jax.block_until_ready(fn(x, wq, wk, wv))

    ref = _reference(x, wq, wk, wv)
    assert out.shape == (B, T, NUM_HEADS * D_OUT), out.shape
    assert jnp.allclose(out, ref, atol=1e-5, rtol=1e-5), \
        float(jnp.max(jnp.abs(out - ref)))

    print("KERNEL_OK")
</pallas_src>

<mosaic_0001>
module attributes {stable_mosaic.version = 11 : i64} {
  func.func @_fused_mha_kernel(%arg0: memref<12x3xf32, #tpu.memory_space<vmem>>, %arg1: memref<3x12xf32, #tpu.memory_space<vmem>>, %arg2: memref<3x4xf32, #tpu.memory_space<vmem>>, %arg3: memref<4x3xf32, #tpu.memory_space<vmem>>, %arg4: memref<4x3xf32, #tpu.memory_space<vmem>>, %arg5: memref<12x12xf32, #tpu.memory_space<vmem>>, %arg6: memref<12x4xf32, #tpu.memory_space<vmem>>) attributes {dimension_semantics = [], scalar_prefetch = 0 : i64, scratch_operands = 0 : i64, tpu.core_type = #tpu.core_type<tc>} {
    %c0 = arith.constant 0 : index
    %c0_0 = arith.constant 0 : index
    %0 = vector.load %arg0[%c0, %c0_0] : memref<12x3xf32, #tpu.memory_space<vmem>>, vector<12x3xf32>
    %c0_1 = arith.constant 0 : index
    %c0_2 = arith.constant 0 : index
    %1 = vector.load %arg1[%c0_1, %c0_2] : memref<3x12xf32, #tpu.memory_space<vmem>>, vector<3x12xf32>
    %c0_3 = arith.constant 0 : index
    %c0_4 = arith.constant 0 : index
    %2 = vector.load %arg2[%c0_3, %c0_4] : memref<3x4xf32, #tpu.memory_space<vmem>>, vector<3x4xf32>
    %c0_5 = arith.constant 0 : index
    %c0_6 = arith.constant 0 : index
    %3 = vector.load %arg3[%c0_5, %c0_6] : memref<4x3xf32, #tpu.memory_space<vmem>>, vector<4x3xf32>
    %c0_7 = arith.constant 0 : index
    %c0_8 = arith.constant 0 : index
    %4 = vector.load %arg4[%c0_7, %c0_8] : memref<4x3xf32, #tpu.memory_space<vmem>>, vector<4x3xf32>
    %c0_9 = arith.constant 0 : index
    %c0_10 = arith.constant 0 : index
    %5 = vector.load %arg5[%c0_9, %c0_10] : memref<12x12xf32, #tpu.memory_space<vmem>>, vector<12x12xf32>
    %6 = vector.extract_strided_slice %0 {offsets = [0, 0], sizes = [12, 1], strides = [1, 1]} : vector<12x3xf32> to vector<12x1xf32>
    %7 = vector.extract_strided_slice %2 {offsets = [0, 0], sizes = [1, 4], strides = [1, 1]} : vector<3x4xf32> to vector<1x4xf32>
    %8 = vector.broadcast %6 : vector<12x1xf32> to vector<12x4xf32>
    %9 = vector.broadcast %7 : vector<1x4xf32> to vector<12x4xf32>
    %10 = arith.mulf %8, %9 : vector<12x4xf32>
    %11 = vector.extract_strided_slice %3 {offsets = [0, 0], sizes = [4, 1], strides = [1, 1]} : vector<4x3xf32> to vector<4x1xf32>
    %12 = vector.extract_strided_slice %1 {offsets = [0, 0], sizes = [1, 12], strides = [1, 1]} : vector<3x12xf32> to vector<1x12xf32>
    %13 = vector.broadcast %11 : vector<4x1xf32> to vector<4x12xf32>
    %14 = vector.broadcast %12 : vector<1x12xf32> to vector<4x12xf32>
    %15 = arith.mulf %13, %14 : vector<4x12xf32>
    %16 = vector.extract_strided_slice %4 {offsets = [0, 0], sizes = [4, 1], strides = [1, 1]} : vector<4x3xf32> to vector<4x1xf32>
    %17 = vector.extract_strided_slice %1 {offsets = [0, 0], sizes = [1, 12], strides = [1, 1]} : vector<3x12xf32> to vector<1x12xf32>
    %18 = vector.broadcast %16 : vector<4x1xf32> to vector<4x12xf32>
    %19 = vector.broadcast %17 : vector<1x12xf32> to vector<4x12xf32>
    %20 = arith.mulf %18, %19 : vector<4x12xf32>
    %21 = vector.extract_strided_slice %0 {offsets = [0, 1], sizes = [12, 1], strides = [1, 1]} : vector<12x3xf32> to vector<12x1xf32>
    %22 = vector.extract_strided_slice %2 {offsets = [1, 0], sizes = [1, 4], strides = [1, 1]} : vector<3x4xf32> to vector<1x4xf32>
    %23 = vector.broadcast %21 : vector<12x1xf32> to vector<12x4xf32>
    %24 = vector.broadcast %22 : vector<1x4xf32> to vector<12x4xf32>
    %25 = arith.mulf %23, %24 : vector<12x4xf32>
    %26 = arith.addf %10, %25 : vector<12x4xf32>
    %27 = vector.extract_strided_slice %3 {offsets = [0, 1], sizes = [4, 1], strides = [1, 1]} : vector<4x3xf32> to vector<4x1xf32>
    %28 = vector.extract_strided_slice %1 {offsets = [1, 0], sizes = [1, 12], strides = [1, 1]} : vector<3x12xf32> to vector<1x12xf32>
    %29 = vector.broadcast %27 : vector<4x1xf32> to vector<4x12xf32>
    %30 = vector.broadcast %28 : vector<1x12xf32> to vector<4x12xf32>
    %31 = arith.mulf %29, %30 : vector<4x12xf32>
    %32 = arith.addf %15, %31 : vector<4x12xf32>
    %33 = vector.extract_strided_slice %4 {offsets = [0, 1], sizes = [4, 1], strides = [1, 1]} : vector<4x3xf32> to vector<4x1xf32>
    %34 = vector.extract_strided_slice %1 {offsets = [1, 0], sizes = [1, 12], strides = [1, 1]} : vector<3x12xf32> to vector<1x12xf32>
    %35 = vector.broadcast %33 : vector<4x1xf32> to vector<4x12xf32>
    %36 = vector.broadcast %34 : vector<1x12xf32> to vector<4x12xf32>
    %37 = arith.mulf %35, %36 : vector<4x12xf32>
    %38 = arith.addf %20, %37 : vector<4x12xf32>
    %39 = vector.extract_strided_slice %0 {offsets = [0, 2], sizes = [12, 1], strides = [1, 1]} : vector<12x3xf32> to vector<12x1xf32>
    %40 = vector.extract_strided_slice %2 {offsets = [2, 0], sizes = [1, 4], strides = [1, 1]} : vector<3x4xf32> to vector<1x4xf32>
    %41 = vector.broadcast %39 : vector<12x1xf32> to vector<12x4xf32>
    %42 = vector.broadcast %40 : vector<1x4xf32> to vector<12x4xf32>
    %43 = arith.mulf %41, %42 : vector<12x4xf32>
    %44 = arith.addf %26, %43 : vector<12x4xf32>
    %45 = vector.extract_strided_slice %3 {offsets = [0, 2], sizes = [4, 1], strides = [1, 1]} : vector<4x3xf32> to vector<4x1xf32>
    %46 = vector.extract_strided_slice %1 {offsets = [2, 0], sizes = [1, 12], strides = [1, 1]} : vector<3x12xf32> to vector<1x12xf32>
    %47 = vector.broadcast %45 : vector<4x1xf32> to vector<4x12xf32>
    %48 = vector.broadcast %46 : vector<1x12xf32> to vector<4x12xf32>
    %49 = arith.mulf %47, %48 : vector<4x12xf32>
    %50 = arith.addf %32, %49 : vector<4x12xf32>
    %51 = vector.extract_strided_slice %4 {offsets = [0, 2], sizes = [4, 1], strides = [1, 1]} : vector<4x3xf32> to vector<4x1xf32>
    %52 = vector.extract_strided_slice %1 {offsets = [2, 0], sizes = [1, 12], strides = [1, 1]} : vector<3x12xf32> to vector<1x12xf32>
    %53 = vector.broadcast %51 : vector<4x1xf32> to vector<4x12xf32>
    %54 = vector.broadcast %52 : vector<1x12xf32> to vector<4x12xf32>
    %55 = arith.mulf %53, %54 : vector<4x12xf32>
    %56 = arith.addf %38, %55 : vector<4x12xf32>
    %cst = arith.constant 0.707106769 : f32
    %57 = vector.broadcast %cst : f32 to vector<12x4xf32>
    %58 = arith.mulf %44, %57 : vector<12x4xf32>
    %59 = tpu.iota {dimensions = array<i32: 1>} : vector<1x4xi32>
    %cst_11 = arith.constant 0.000000e+00 : f32
    %60 = vector.broadcast %cst_11 : f32 to vector<12x4xf32>
    %61 = vector.extract_strided_slice %58 {offsets = [0, 0], sizes = [12, 2], strides = [1, 1]} : vector<12x4xf32> to vector<12x2xf32>
    %62 = vector.extract_strided_slice %50 {offsets = [0, 0], sizes = [2, 12], strides = [1, 1]} : vector<4x12xf32> to vector<2x12xf32>
    %63 = vector.extract_strided_slice %61 {offsets = [0, 0], sizes = [12, 1], strides = [1, 1]} : vector<12x2xf32> to vector<12x1xf32>
    %64 = vector.extract_strided_slice %62 {offsets = [0, 0], sizes = [1, 12], strides = [1, 1]} : vector<2x12xf32> to vector<1x12xf32>
    %65 = vector.broadcast %63 : vector<12x1xf32> to vector<12x12xf32>
    %66 = vector.broadcast %64 : vector<1x12xf32> to vector<12x12xf32>
    %67 = arith.mulf %65, %66 : vector<12x12xf32>
    %68 = vector.extract_strided_slice %61 {offsets = [0, 1], sizes = [12, 1], strides = [1, 1]} : vector<12x2xf32> to vector<12x1xf32>
    %69 = vector.extract_strided_slice %62 {offsets = [1, 0], sizes = [1, 12], strides = [1, 1]} : vector<2x12xf32> to vector<1x12xf32>
    %70 = vector.broadcast %68 : vector<12x1xf32> to vector<12x12xf32>
    %71 = vector.broadcast %69 : vector<1x12xf32> to vector<12x12xf32>
    %72 = arith.mulf %70, %71 : vector<12x12xf32>
    %73 = arith.addf %67, %72 : vector<12x12xf32>
    %74 = arith.addf %73, %5 : vector<12x12xf32>
    %cst_12 = arith.constant dense<0xFF800000> : vector<12xf32>
    %75 = vector.multi_reduction <maximumf>, %74, %cst_12 [1] : vector<12x12xf32> to vector<12xf32>
    %76 = vector.shape_cast %75 : vector<12xf32> to vector<12x1xf32>
    %77 = vector.broadcast %76 : vector<12x1xf32> to vector<12x12xf32>
    %78 = arith.subf %74, %77 : vector<12x12xf32>
    %79 = math.exp %78 : vector<12x12xf32>
    %cst_13 = arith.constant dense<0.000000e+00> : vector<12xf32>
    %80 = vector.multi_reduction <add>, %79, %cst_13 [1] : vector<12x12xf32> to vector<12xf32>
    %81 = vector.shape_cast %80 : vector<12xf32> to vector<12x1xf32>
    %82 = tpu.reciprocal %81 {approx = true} : vector<12x1xf32> -> vector<12x1xf32>
    %83 = arith.mulf %81, %82 : vector<12x1xf32>
    %cst_14 = arith.constant 2.000000e+00 : f32
    %84 = vector.broadcast %cst_14 : f32 to vector<12x1xf32>
    %85 = arith.subf %84, %83 : vector<12x1xf32>
    %86 = arith.mulf %82, %85 : vector<12x1xf32>
    %87 = vector.broadcast %86 : vector<12x1xf32> to vector<12x12xf32>
    %88 = arith.mulf %79, %87 : vector<12x12xf32>
    %89 = vector.extract_strided_slice %56 {offsets = [0, 0], sizes = [1, 12], strides = [1, 1]} : vector<4x12xf32> to vector<1x12xf32>
    %90 = vector.broadcast %89 : vector<1x12xf32> to vector<12x12xf32>
    %91 = arith.mulf %88, %90 : vector<12x12xf32>
    %cst_15 = arith.constant dense<0.000000e+00> : vector<12xf32>
    %92 = vector.multi_reduction <add>, %91, %cst_15 [1] : vector<12x12xf32> to vector<12xf32>
    %93 = vector.shape_cast %92 : vector<12xf32> to vector<12x1xf32>
    %c0_i32 = arith.constant 0 : i32
    %94 = vector.broadcast %c0_i32 : i32 to vector<1x4xi32>
    %95 = arith.cmpi eq, %59, %94 : vector<1x4xi32>
    %cst_16 = arith.constant 0.000000e+00 : f32
    %96 = vector.shape_cast %95 : vector<1x4xi1> to vector<1x4xi1>
    %97 = vector.broadcast %96 : vector<1x4xi1> to vector<12x4xi1>
    %98 = vector.shape_cast %93 : vector<12x1xf32> to vector<12x1xf32>
    %99 = vector.broadcast %98 : vector<12x1xf32> to vector<12x4xf32>
    %100 = vector.broadcast %cst_16 : f32 to vector<12x4xf32>
    %101 = arith.select %97, %99, %100 : vector<12x4xi1>, vector<12x4xf32>
    %102 = arith.addf %60, %101 : vector<12x4xf32>
    %103 = vector.extract_strided_slice %56 {offsets = [1, 0], sizes = [1, 12], strides = [1, 1]} : vector<4x12xf32> to vector<1x12xf32>
    %104 = vector.broadcast %103 : vector<1x12xf32> to vector<12x12xf32>
    %105 = arith.mulf %88, %104 : vector<12x12xf32>
    %cst_17 = arith.constant dense<0.000000e+00> : vector<12xf32>
    %106 = vector.multi_reduction <add>, %105, %cst_17 [1] : vector<12x12xf32> to vector<12xf32>
    %107 = vector.shape_cast %106 : vector<12xf32> to vector<12x1xf32>
    %c1_i32 = arith.constant 1 : i32
    %108 = vector.broadcast %c1_i32 : i32 to vector<1x4xi32>
    %109 = arith.cmpi eq, %59, %108 : vector<1x4xi32>
    %cst_18 = arith.constant 0.000000e+00 : f32
    %110 = vector.shape_cast %109 : vector<1x4xi1> to vector<1x4xi1>
    %111 = vector.broadcast %110 : vector<1x4xi1> to vector<12x4xi1>
    %112 = vector.shape_cast %107 : vector<12x1xf32> to vector<12x1xf32>
    %113 = vector.broadcast %112 : vector<12x1xf32> to vector<12x4xf32>
    %114 = vector.broadcast %cst_18 : f32 to vector<12x4xf32>
    %115 = arith.select %111, %113, %114 : vector<12x4xi1>, vector<12x4xf32>
    %116 = arith.addf %102, %115 : vector<12x4xf32>
    %117 = vector.extract_strided_slice %58 {offsets = [0, 2], sizes = [12, 2], strides = [1, 1]} : vector<12x4xf32> to vector<12x2xf32>
    %118 = vector.extract_strided_slice %50 {offsets = [2, 0], sizes = [2, 12], strides = [1, 1]} : vector<4x12xf32> to vector<2x12xf32>
    %119 = vector.extract_strided_slice %117 {offsets = [0, 0], sizes = [12, 1], strides = [1, 1]} : vector<12x2xf32> to vector<12x1xf32>
    %120 = vector.extract_strided_slice %118 {offsets = [0, 0], sizes = [1, 12], strides = [1, 1]} : vector<2x12xf32> to vector<1x12xf32>
    %121 = vector.broadcast %119 : vector<12x1xf32> to vector<12x12xf32>
    %122 = vector.broadcast %120 : vector<1x12xf32> to vector<12x12xf32>
    %123 = arith.mulf %121, %122 : vector<12x12xf32>
    %124 = vector.extract_strided_slice %117 {offsets = [0, 1], sizes = [12, 1], strides = [1, 1]} : vector<12x2xf32> to vector<12x1xf32>
    %125 = vector.extract_strided_slice %118 {offsets = [1, 0], sizes = [1, 12], strides = [1, 1]} : vector<2x12xf32> to vector<1x12xf32>
    %126 = vector.broadcast %124 : vector<12x1xf32> to vector<12x12xf32>
    %127 = vector.broadcast %125 : vector<1x12xf32> to vector<12x12xf32>
    %128 = arith.mulf %126, %127 : vector<12x12xf32>
    %129 = arith.addf %123, %128 : vector<12x12xf32>
    %130 = arith.addf %129, %5 : vector<12x12xf32>
    %cst_19 = arith.constant dense<0xFF800000> : vector<12xf32>
    %131 = vector.multi_reduction <maximumf>, %130, %cst_19 [1] : vector<12x12xf32> to vector<12xf32>
    %132 = vector.shape_cast %131 : vector<12xf32> to vector<12x1xf32>
    %133 = vector.broadcast %132 : vector<12x1xf32> to vector<12x12xf32>
    %134 = arith.subf %130, %133 : vector<12x12xf32>
    %135 = math.exp %134 : vector<12x12xf32>
    %cst_20 = arith.constant dense<0.000000e+00> : vector<12xf32>
    %136 = vector.multi_reduction <add>, %135, %cst_20 [1] : vector<12x12xf32> to vector<12xf32>
    %137 = vector.shape_cast %136 : vector<12xf32> to vector<12x1xf32>
    %138 = tpu.reciprocal %137 {approx = true} : vector<12x1xf32> -> vector<12x1xf32>
    %139 = arith.mulf %137, %138 : vector<12x1xf32>
    %cst_21 = arith.constant 2.000000e+00 : f32
    %140 = vector.broadcast %cst_21 : f32 to vector<12x1xf32>
    %141 = arith.subf %140, %139 : vector<12x1xf32>
    %142 = arith.mulf %138, %141 : vector<12x1xf32>
    %143 = vector.broadcast %142 : vector<12x1xf32> to vector<12x12xf32>
    %144 = arith.mulf %135, %143 : vector<12x12xf32>
    %145 = vector.extract_strided_slice %56 {offsets = [2, 0], sizes = [1, 12], strides = [1, 1]} : vector<4x12xf32> to vector<1x12xf32>
    %146 = vector.broadcast %145 : vector<1x12xf32> to vector<12x12xf32>
    %147 = arith.mulf %144, %146 : vector<12x12xf32>
    %cst_22 = arith.constant dense<0.000000e+00> : vector<12xf32>
    %148 = vector.multi_reduction <add>, %147, %cst_22 [1] : vector<12x12xf32> to vector<12xf32>
    %149 = vector.shape_cast %148 : vector<12xf32> to vector<12x1xf32>
    %c2_i32 = arith.constant 2 : i32
    %150 = vector.broadcast %c2_i32 : i32 to vector<1x4xi32>
    %151 = arith.cmpi eq, %59, %150 : vector<1x4xi32>
    %cst_23 = arith.constant 0.000000e+00 : f32
    %152 = vector.shape_cast %151 : vector<1x4xi1> to vector<1x4xi1>
    %153 = vector.broadcast %152 : vector<1x4xi1> to vector<12x4xi1>
    %154 = vector.shape_cast %149 : vector<12x1xf32> to vector<12x1xf32>
    %155 = vector.broadcast %154 : vector<12x1xf32> to vector<12x4xf32>
    %156 = vector.broadcast %cst_23 : f32 to vector<12x4xf32>
    %157 = arith.select %153, %155, %156 : vector<12x4xi1>, vector<12x4xf32>
    %158 = arith.addf %116, %157 : vector<12x4xf32>
    %159 = vector.extract_strided_slice %56 {offsets = [3, 0], sizes = [1, 12], strides = [1, 1]} : vector<4x12xf32> to vector<1x12xf32>
    %160 = vector.broadcast %159 : vector<1x12xf32> to vector<12x12xf32>
    %161 = arith.mulf %144, %160 : vector<12x12xf32>
    %cst_24 = arith.constant dense<0.000000e+00> : vector<12xf32>
    %162 = vector.multi_reduction <add>, %161, %cst_24 [1] : vector<12x12xf32> to vector<12xf32>
    %163 = vector.shape_cast %162 : vector<12xf32> to vector<12x1xf32>
    %c3_i32 = arith.constant 3 : i32
    %164 = vector.broadcast %c3_i32 : i32 to vector<1x4xi32>
    %165 = arith.cmpi eq, %59, %164 : vector<1x4xi32>
    %cst_25 = arith.constant 0.000000e+00 : f32
    %166 = vector.shape_cast %165 : vector<1x4xi1> to vector<1x4xi1>
    %167 = vector.broadcast %166 : vector<1x4xi1> to vector<12x4xi1>
    %168 = vector.shape_cast %163 : vector<12x1xf32> to vector<12x1xf32>
    %169 = vector.broadcast %168 : vector<12x1xf32> to vector<12x4xf32>
    %170 = vector.broadcast %cst_25 : f32 to vector<12x4xf32>
    %171 = arith.select %167, %169, %170 : vector<12x4xi1>, vector<12x4xf32>
    %172 = arith.addf %158, %171 : vector<12x4xf32>
    %c0_26 = arith.constant 0 : index
    %c0_27 = arith.constant 0 : index
    %173 = vector.load %arg6[%c0_26, %c0_27] : memref<12x4xf32, #tpu.memory_space<vmem>>, vector<12x4xf32>
    tpu.vector_store %arg6[%c0_26, %c0_27], %172 {strides = array<i32>} : memref<12x4xf32, #tpu.memory_space<vmem>>, vector<12x4xf32>,
    return
  }
}

</mosaic_0001>

<bundles_post_ra>
// kernel: multi_head_attention.1
= control target key start
LH: loop header
LB: loop body
LE: loop exit
PB: predicated region body
PF: predicated region fallthrough
CT: control target
= control target key end

     0   :  { %v377_v0 = vmov 1   ;;  %v378_v1 = vmov 0   ;;  %v379_v4 = vmov 2   ;;  %v41_v6 = vlaneseq  ;;  %s522_s0 = inlined_call_operand.vmem [shape: f32[12,3], index: 0, kind: input, shape index: {}]   ;;  %s523_s3 = inlined_call_operand.vmem [shape: f32[4,3], index: 3, kind: input, shape index: {}]   ;;  %s524_s2 = inlined_call_operand.vmem [shape: f32[3,4], index: 2, kind: input, shape index: {}]   ;;  %s525_s1 = inlined_call_operand.vmem [shape: f32[3,12], index: 1, kind: input, shape index: {}]   ;;  %s526_s5 = inlined_call_operand.vmem [shape: f32[12,12], index: 5, kind: input, shape index: {}]   ;;  %s527_s4 = inlined_call_operand.vmem [shape: f32[4,3], index: 4, kind: input, shape index: {}]   ;;  %s528_s6 = inlined_call_operand.vmem [shape: f32[12,4], index: 6, kind: output, shape index: {}]  }
   0x1   :  { %344 = vset.pattern.permute.xlu1 %v377_v0  ;;  %343 = vset.pattern.permute.xlu0 %v378_v1  ;;  %v23_v2 = vld [vmem:[%s522_s0] sm:$0xff]  ;;  %v24_v3 = vld [vmem:[%s522_s0 + $0x8] sm:$0xf]  ;;  %v380_v33 = vmov 3   ;;  %vm165_vm0 = vcmask 97280   ;;  %vm169_vm1 = vcmask 93184  }
   0x2   :  { %64 = vperm.xlu1 %344, %v23_v2   ;;  %33 = vperm.xlu0 %343, %v23_v2   ;;  %v27_v5 = vld [vmem:[%s523_s3] sm:$0xf]  ;;  %v435_v7 = vshrl.u32 %v41_v6, 7  ;;  %v30_v61 = vld [vmem:[%s526_s5 + $0x8] sm:$0xf]  ;;  %vm331_vm6 = vcmask 31744  }
   0x3   :  { %v26_v10 = vld [vmem:[%s524_s2] sm:$0x7]  ;;  %vm333_vm7 = vcmask 27648  }
   0x4   :  { %v438_v8 = vsub.s32 1, %v435_v7  ;;  %v441_v9 = vsub.s32 0, %v435_v7  ;;  %v447_v13 = vsub.s32 2, %v435_v7  ;;  %v25_v34 = vld [vmem:[%s525_s1] sm:$0x7]  ;;  %v257_v57 = vsub.s32 3, %v435_v7 }
   0x5   :  { %v29_v54 = vld [vmem:[%s526_s5] sm:$0xff] }
   0x6   :  { %68 = vperm.xlu1 %344, %v24_v3   ;;  %38 = vperm.xlu0 %343, %v24_v3   ;;  %v74_v14 = vrot.slane %v26_v10, %v438_v8  ;;  %v44_v15 = vrot.slane %v26_v10, %v441_v9  ;;  %v106_v18 = vrot.slane %v26_v10, %v447_v13 }
   0x7   :  { %v463_v36 = vrot.slane %v25_v34, %v441_v9  ;;  %v466_v37 = vrot.slane %v25_v34, %v438_v8  ;;  %v471_v41 = vrot.slane %v25_v34, %v447_v13 }
   0xa   :  { %346 = vset.pattern.permute.xlu1 %v379_v4  ;;  %345 = vset.pattern.permute.xlu0 %v379_v4 }
   0xb   :  { %100 = vperm.xlu1 %346, %v24_v3   ;;  %96 = vperm.xlu0 %345, %v23_v2  }
   0xf   :  { %347 = vset.pattern.permute.xlu1 %v378_v1  ;;  %348 = vset.pattern.permute.xlu0 %v377_v0 }
  0x10   :  { %49 = vperm.xlu1 %347, %v27_v5   ;;  %80 = vperm.xlu0 %348, %v27_v5  }
  0x14   :  { %349 = vset.pattern.permute.xlu1 %v379_v4  ;;  %351 = vset.pattern.permute.xlu0 %v378_v1 }
  0x15   :  { %112 = vperm.xlu1 %349, %v27_v5  }
  0x19   :  { %350 = vset.pattern.permute.xlu1 %v378_v1 }
  0x81   :  { %v65_v11 = vpop.permute.xlu1 %64  ;;  %v34_v12 = vpop.permute.xlu0 %33 }
  0x82   :  { %v75_v19 = vmul.f32 %v74_v14, %v65_v11  ;;  %v45_v20 = vmul.f32 %v44_v15, %v34_v12 }
  0x84   :  { %v77_v25 = vadd.f32 %v75_v19, %v45_v20 }
  0x85   :  { %v69_v16 = vpop.permute.xlu1 %68  ;;  %v39_v17 = vpop.permute.xlu0 %38 }
  0x86   :  { %v76_v21 = vmul.f32 %v74_v14, %v69_v16  ;;  %v46_v22 = vmul.f32 %v44_v15, %v39_v17 }
  0x88   :  { %v78_v26 = vadd.f32 %v76_v21, %v46_v22 }
  0x8a   :  { %v101_v23 = vpop.permute.xlu1 %100  ;;  %v97_v24 = vpop.permute.xlu0 %96 }
  0x8b   :  { %v108_v27 = vmul.f32 %v106_v18, %v101_v23  ;;  %v107_v28 = vmul.f32 %v106_v18, %v97_v24  ;;  %v28_v23 = vld [vmem:[%s527_s4] sm:$0xf] }
  0x8d   :  { %v110_v29 = vadd.f32 %v108_v27, %v78_v26  ;;  %v109_v30 = vadd.f32 %v107_v28, %v77_v25 }
  0x8f   :  { %v128_v31 = vmul.f32 0.70710677, %v110_v29  ;;  %v127_v32 = vmul.f32 0.70710677, %v109_v30  ;;  %v50_v35 = vpop.permute.xlu1 %49  ;;  %v81_v38 = vpop.permute.xlu0 %80 }
  0x90   :  { %v56_v39 = vmul.f32 %v463_v36, %v50_v35  ;;  %v87_v40 = vmul.f32 %v466_v37, %v81_v38 }
  0x91   :  { %138 = vperm.xlu0 %351, %v128_v31   ;;  %133 = vperm.xlu1 %350, %v127_v32  }
  0x92   :  { %v88_v43 = vadd.f32 %v87_v40, %v56_v39 }
  0x94   :  { %v113_v42 = vpop.permute.xlu1 %112 }
  0x95   :  { %353 = vset.pattern.permute.xlu0 %v379_v4  ;;  %352 = vset.pattern.permute.xlu1 %v377_v0  ;;  %v119_v44 = vmul.f32 %v471_v41, %v113_v42 }
  0x96   :  { %234 = vperm.xlu0 %353, %v127_v32   ;;  %148 = vperm.xlu1 %352, %v127_v32  }
  0x97   :  { %v120_v45 = vadd.f32 %v119_v44, %v88_v43 }
  0x99   :  { %v144_v48 = vrot.slane %v120_v45, %v441_v9  ;;  %v158_v49 = vrot.slane %v120_v45, %v438_v8  ;;  %v258_v2 = vrot.slane %v120_v45, %v257_v57 }
  0x9a   :  { %356 = vset.pattern.permute.xlu0 %v380_v33  ;;  %152 = vperm.xlu1 %352, %v128_v31  }
  0x9b   :  { %252 = vperm.xlu0 %356, %v128_v31  }
  0x9e   :  { %354 = vset.pattern.permute.xlu1 %v379_v4 }
  0x9f   :  { %238 = vperm.xlu1 %354, %v128_v31   ;;  %358 = vset.pattern.permute.xlu0 %v377_v0 }
  0xa3   :  { %355 = vset.pattern.permute.xlu1 %v380_v33 }
  0xa4   :  { %248 = vperm.xlu1 %355, %v127_v32  }
  0xa8   :  { %357 = vset.pattern.permute.xlu1 %v378_v1  ;;  %v244_v1 = vrot.slane %v120_v45, %v447_v13 }
 0x110   :  { %v134_v46 = vpop.permute.xlu1 %133  ;;  %v139_v47 = vpop.permute.xlu0 %138 }
 0x111   :  { %v145_v51 = vmul.f32 %v144_v48, %v134_v46  ;;  %v146_v58 = vmul.f32 %v144_v48, %v139_v47 }
 0x115   :  { %v149_v50 = vpop.permute.xlu1 %148  ;;  %v235_v53 = vpop.permute.xlu0 %234 }
 0x116   :  { %v159_v52 = vmul.f32 %v158_v49, %v149_v50  ;;  %v245_v17 = vmul.f32 %v244_v1, %v235_v53 }
 0x118   :  { %v161_v55 = vadd.f32 %v159_v52, %v145_v51 }
 0x119   :  { %v153_v56 = vpop.permute.xlu1 %152 }
 0x11a   :  { %v160_v59 = vmul.f32 %v158_v49, %v153_v56  ;;  %v163_v60 = vadd.f32 %v161_v55, %v29_v54  ;;  %v253_v63 = vpop.permute.xlu0 %252 }
 0x11b   :  { %v260_v10 = vmul.f32 %v258_v2, %v253_v63 }
 0x11c   :  { %v162_v62 = vadd.f32 %v160_v59, %v146_v58  ;;  %v166_v0 = vsel %vm165_vm0, %v163_v60, -inf }
 0x11d   :  { %167 = vmax.xlane.f32.xlu1 %v166_v0 }
 0x11e   :  { %v239_v3 = vpop.permute.xlu1 %238  ;;  %v164_v5 = vadd.f32 %v162_v62, %v30_v61 }
 0x11f   :  { %v246_v11 = vmul.f32 %v244_v1, %v239_v3 }
 0x120   :  { %v170_v12 = vsel %vm169_vm1, %v164_v5, -inf }
 0x121   :  { %v262_v14 = vadd.f32 %v260_v10, %v246_v11  ;;  %171 = vmax.xlane.f32.xlu0 %v170_v12 }
 0x123   :  { %v249_v15 = vpop.permute.xlu1 %248  ;;  %v264_v16 = vadd.f32 %v262_v14, %v30_v61 }
 0x124   :  { %v259_v18 = vmul.f32 %v258_v2, %v249_v15 }
 0x125   :  { %v268_v19 = vsel %vm169_vm1, %v264_v16, -inf }
 0x126   :  { %v261_v20 = vadd.f32 %v259_v18, %v245_v17  ;;  %269 = vmax.xlane.f32.xlu0 %v268_v19 }
 0x128   :  { %v263_v21 = vadd.f32 %v261_v20, %v29_v54 }
 0x12a   :  { %v265_v22 = vsel %vm165_vm0, %v263_v21, -inf }
 0x12b   :  { %266 = vmax.xlane.f32.xlu1 %v265_v22 }
 0x13c   :  { %59 = vperm.xlu1 %357, %v28_v23  }
 0x140   :  { %359 = vset.pattern.permute.xlu1 %v379_v4 }
 0x1aa   :  { %v168_v24 = vpop.xlane.xlu1 %167 }
 0x1ab   :  { %v173_v25 = vsub.f32 %v163_v60, %v168_v24 }
 0x1ad   :  { %v175_v26 = vmul.f32 1.442695, %v173_v25 }
 0x1ae   :  { %v172_v27 = vpop.xlane.xlu0 %171 }
 0x1af   :  { %361 = vpow2.f32 %v175_v26  ;;  %v174_v28 = vsub.f32 %v164_v5, %v172_v27 }
 0x1b1   :  { %v177_v29 = vmul.f32 1.442695, %v174_v28 }
 0x1b3   :  { %363 = vpow2.f32 %v177_v29  ;;  %v270_v30 = vpop.xlane.xlu0 %269 }
 0x1b4   :  { %v272_v31 = vsub.f32 %v264_v16, %v270_v30 }
 0x1b6   :  { %v275_v32 = vmul.f32 1.442695, %v272_v31 }
 0x1b8   :  { %365 = vpow2.f32 %v275_v32  ;;  %v267_v34 = vpop.xlane.xlu1 %266 }
 0x1b9   :  { %v362_v35 = vpop.eup %361  ;;  %v271_v38 = vsub.f32 %v263_v21, %v267_v34 }
 0x1ba   :  { %v179_v39 = vsel %vm165_vm0, %v362_v35, 0.0 }
 0x1bb   :  { %v273_v40 = vmul.f32 1.442695, %v271_v38  ;;  %180 = vadd.xlane.f32.xlu1 %v179_v39 }
 0x1bc   :  { %v60_v47 = vpop.permute.xlu1 %59 }
 0x1bd   :  { %v364_v4 = vpop.eup %363  ;;  %367 = vpow2.f32 %v273_v40  ;;  %v62_v59 = vmul.f32 %v60_v47, %v463_v36 }
 0x1be   :  { %v182_v42 = vsel %vm169_vm1, %v364_v4, 0.0 }
 0x1bf   :  { %183 = vadd.xlane.f32.xlu0 %v182_v42 }
 0x1c2   :  { %v366_v43 = vpop.eup %365 }
 0x1c3   :  { %v280_v44 = vsel %vm169_vm1, %v366_v43, 0.0 }
 0x1c4   :  { %281 = vadd.xlane.f32.xlu0 %v280_v44 }
 0x1c7   :  { %v368_v45 = vpop.eup %367 }
 0x1c8   :  { %v277_v46 = vsel %vm165_vm0, %v368_v45, 0.0 }
 0x1c9   :  { %278 = vadd.xlane.f32.xlu1 %v277_v46 }
 0x1da   :  { %90 = vperm.xlu0 %358, %v28_v23   ;;  %122 = vperm.xlu1 %359, %v28_v23  }
 0x1de   :  { %360 = vset.pattern.permute.xlu0 %v380_v33 }
 0x248   :  { %v181_v48 = vpop.xlane.xlu1 %180 }
 0x249   :  { %369 = vrcp.f32 %v181_v48 }
 0x24c   :  { %v184_v49 = vpop.xlane.xlu0 %183 }
 0x24d   :  { %371 = vrcp.f32 %v184_v49 }
 0x251   :  { %v282_v50 = vpop.xlane.xlu0 %281 }
 0x252   :  { %373 = vrcp.f32 %v282_v50 }
 0x253   :  { %v370_v51 = vpop.eup %369 }
 0x254   :  { %v187_v52 = vmul.f32 %v370_v51, %v181_v48 }
 0x256   :  { %v279_v53 = vpop.xlane.xlu1 %278  ;;  %v189_v55 = vsub.f32 2.0, %v187_v52 }
 0x257   :  { %v372_v54 = vpop.eup %371  ;;  %375 = vrcp.f32 %v279_v53 }
 0x258   :  { %v188_v56 = vmul.f32 %v372_v54, %v184_v49  ;;  %v191_v0 = vmul.f32 %v370_v51, %v189_v55 }
 0x259   :  { %v91_v58 = vpop.permute.xlu0 %90 }
 0x25a   :  { %v190_v60 = vsub.f32 2.0, %v188_v56  ;;  %v93_v33 = vmul.f32 %v91_v58, %v466_v37  ;;  %v123_v61 = vpop.permute.xlu1 %122  ;;  %v193_v12 = vmul.f32 %v362_v35, %v191_v0 }
 0x25b   :  { %v125_v62 = vmul.f32 %v123_v61, %v471_v41 }
 0x25c   :  { %v374_v63 = vpop.eup %373  ;;  %v192_v1 = vmul.f32 %v372_v54, %v190_v60  ;;  %v94_v2 = vadd.f32 %v93_v33, %v62_v59 }
 0x25d   :  { %v286_v5 = vmul.f32 %v374_v63, %v282_v50 }
 0x25e   :  { %v126_v3 = vadd.f32 %v125_v62, %v94_v2  ;;  %v194_v10 = vmul.f32 %v364_v4, %v192_v1  ;;  %v130_v4 = vand.u32 127, %v41_v6 }
 0x25f   :  { %v288_v37 = vsub.f32 2.0, %v286_v5 }
 0x260   :  { %v198_v11 = vrot.slane %v126_v3, %v441_v9  ;;  %v217_v14 = vrot.slane %v126_v3, %v438_v8  ;;  %v296_v8 = vrot.slane %v126_v3, %v447_v13  ;;  %v315_v30 = vrot.slane %v126_v3, %v257_v57 }
 0x261   :  { %v376_v15 = vpop.eup %375  ;;  %v290_v22 = vmul.f32 %v374_v63, %v288_v37  ;;  %vm226_vm2 = vcmp.eq.s32.totalorder %v130_v4, 1  ;;  %vm207_vm3 = vcmp.eq.s32.totalorder %v130_v4, 0  ;;  %vm305_vm4 = vcmp.eq.s32.totalorder %v130_v4, 2 }
 0x262   :  { %v285_v36 = vmul.f32 %v376_v15, %v279_v53  ;;  %v200_v16 = vmul.f32 %v198_v11, %v194_v10  ;;  %v199_v17 = vmul.f32 %v198_v11, %v193_v12  ;;  %v218_v20 = vmul.f32 %v217_v14, %v193_v12 }
 0x263   :  { %v219_v23 = vmul.f32 %v217_v14, %v194_v10  ;;  %v292_v27 = vmul.f32 %v366_v43, %v290_v22  ;;  %vm324_vm5 = vcmp.eq.s32.totalorder %v130_v4, 3 }
 0x264   :  { %v287_v18 = vsub.f32 2.0, %v285_v36  ;;  %v204_v41 = vsel %vm169_vm1, %v200_v16, 0.0  ;;  %v201_v19 = vsel %vm165_vm0, %v199_v17, 0.0  ;;  %v220_v9 = vsel %vm165_vm0, %v218_v20, 0.0 }
 0x265   :  { %205 = vadd.xlane.f32.xlu0 %v204_v41  ;;  %202 = vadd.xlane.f32.xlu1 %v201_v19  ;;  %v223_v25 = vsel %vm169_vm1, %v219_v23, 0.0  ;;  %v298_v29 = vmul.f32 %v296_v8, %v292_v27  ;;  %v317_v35 = vmul.f32 %v315_v30, %v292_v27 }
 0x266   :  { %v289_v21 = vmul.f32 %v376_v15, %v287_v18 }
 0x267   :  { %v302_v31 = vsel %vm169_vm1, %v298_v29, 0.0  ;;  %v321_v13 = vsel %vm169_vm1, %v317_v35, 0.0 }
 0x268   :  { %v291_v24 = vmul.f32 %v368_v45, %v289_v21 }
 0x269   :  { %221 = vadd.xlane.f32.xlu1 %v220_v9 }
 0x26a   :  { %v297_v26 = vmul.f32 %v296_v8, %v291_v24  ;;  %v316_v32 = vmul.f32 %v315_v30, %v291_v24 }
 0x26c   :  { %v299_v28 = vsel %vm165_vm0, %v297_v26, 0.0  ;;  %v318_v34 = vsel %vm165_vm0, %v316_v32, 0.0 }
 0x26d   :  { %224 = vadd.xlane.f32.xlu1 %v223_v25 }
 0x271   :  { %300 = vadd.xlane.f32.xlu1 %v299_v28 }
 0x275   :  { %303 = vadd.xlane.f32.xlu1 %v302_v31 }
 0x279   :  { %319 = vadd.xlane.f32.xlu1 %v318_v34 }
 0x27d   :  { %322 = vadd.xlane.f32.xlu1 %v321_v13 }
 0x2f2   :  { %v203_v38 = vpop.xlane.xlu1 %202  ;;  %v206_v45 = vpop.xlane.xlu0 %205 }
 0x2f3   :  { %v210_v43 = vsel %vm207_vm3, %v203_v38, 0.0  ;;  %v211_v50 = vsel %vm207_vm3, %v206_v45, 0.0 }
 0x2f6   :  { %v222_v39 = vpop.xlane.xlu1 %221 }
 0x2f7   :  { %v229_v7 = vsel %vm226_vm2, %v222_v39, 0.0 }
 0x2f8   :  { %v231_v46 = vadd.f32 %v229_v7, %v210_v43 }
 0x2fa   :  { %v225_v40 = vpop.xlane.xlu1 %224 }
 0x2fb   :  { %v230_v47 = vsel %vm226_vm2, %v225_v40, 0.0 }
 0x2fc   :  { %v232_v53 = vadd.f32 %v230_v47, %v211_v50 }
 0x2fe   :  { %v301_v42 = vpop.xlane.xlu1 %300 }
 0x2ff   :  { %v308_v44 = vsel %vm305_vm4, %v301_v42, 0.0 }
 0x300   :  { %v310_v48 = vadd.f32 %v308_v44, %v231_v46 }
 0x302   :  { %v304_v57 = vpop.xlane.xlu1 %303 }
 0x303   :  { %v309_v51 = vsel %vm305_vm4, %v304_v57, 0.0 }
 0x304   :  { %v311_v54 = vadd.f32 %v309_v51, %v232_v53 }
 0x306   :  { %v320_v49 = vpop.xlane.xlu1 %319 }
 0x307   :  { %v327_v52 = vsel %vm324_vm5, %v320_v49, 0.0 }
 0x308   :  { %v329_v6 = vadd.f32 %v327_v52, %v310_v48 }
 0x30a   :  { %332 = vst.msk [vmem:[%s528_s6] sm:$0xff] %vm331_vm6, %v329_v6  ;;  %v323_v55 = vpop.xlane.xlu1 %322 }
 0x30b   :  { %v328_v56 = vsel %vm324_vm5, %v323_v55, 0.0 }
 0x30c   :  { %v330_v58 = vadd.f32 %v328_v56, %v311_v54 }
 0x30e   :  { %334 = vst.msk [vmem:[%s528_s6 + $0x8] sm:$0xf] %vm333_vm7, %v330_v58 }

</bundles_post_ra>
